<compile_context>
chip_gen: v7x
topology: tpu7x:2x2x1
jax: 0.10.0
libtpu: 0.0.40
codegen_flags: <defaults>
</compile_context>

<pallas_src>
import functools

import jax
import jax.numpy as jnp
from jax.experimental import pallas as pl
from jax.experimental.pallas import tpu as pltpu

_LANE = 128              # batch tile size must be a multiple of the lane width
_MAX_BLOCK_BATCH = 4096  # max batch rows per grid step (VMEM use is still tiny)


def _round_up(n: int, m: int) -> int:
    return ((n + m - 1) // m) * m


def _cdiv(a: int, b: int) -> int:
    return (a + b - 1) // b


def _make_mlp_kernel(n_layers: int):
    """Whole (padded, feature-major) MLP on one batch tile; weights VMEM-resident."""

    def kernel(*refs):
        x_ref, o_ref = refs[0], refs[-1]
        wb = refs[1:-1]                               # wT1, b1, wT2, b2, ..., wTN, bN
        h = x_ref[...]                                # (in_pad, bp) f32
        for i in range(n_layers):
            wt = wb[2 * i][...]                       # (out_pad_i, in_pad_i) compute dtype
            b = wb[2 * i + 1][...]                    # (out_pad_i, 1) f32, lane-broadcast
            acc = jnp.dot(wt, h.astype(wt.dtype),
                          preferred_element_type=jnp.float32) + b
            if i + 1 < n_layers:
                # relu(relu(x)) == relu(x); keep inter-layer activations in the
                # matmul dtype (bf16 on TPU) to halve VMEM/spill traffic.
                h = jnp.maximum(acc, 0.0).astype(wt.dtype)
            else:
                h = jnp.tanh(acc)                     # output head, f32
        o_ref[...] = h.astype(o_ref.dtype)            # lane-dense (bp % 128 == 0) small store

    return kernel


def pad_params(params, weight_dtype=jnp.float32):
    """Transpose + zero-pad (w, b) pairs for the feature-major kernel. Do ONCE at init.

    Weights are stored transposed, (out_features, in_features), in `weight_dtype`;
    biases are (out_features, 1) f32 (bias-add / ReLU / tanh run in f32).  Feature
    dims are padded only to a sublane multiple -- no 128-lane inflation.  Zero pad
    rows/cols are numerically inert (0 after ReLU, tanh(0)=0, sliced away).
    """
    sub = 16 if weight_dtype == jnp.bfloat16 else 8
    padded = []
    for w, b in params:
        in_d, out_d = w.shape
        in_p = _round_up(in_d, sub)
        out_p = _round_up(out_d, sub)
        wt = jnp.zeros((out_p, in_p), weight_dtype).at[:out_d, :in_d].set(
            w.T.astype(weight_dtype))
        bt = jnp.zeros((out_p, 1), jnp.float32).at[:out_d, 0].set(
            jnp.reshape(b, (-1,)).astype(jnp.float32))
        padded.append((wt, bt))
    return padded


@functools.partial(jax.jit, static_argnames=("out_dim",))
def network_forward(x, padded_params, *, out_dim):
    """Full MLP forward in a single Pallas kernel, feature-major, tiled over batch."""
    B, in_dim = x.shape
    n_layers = len(padded_params)
    in_pad = padded_params[0][0].shape[1]             # wT is (out_pad, in_pad)
    out_pad = padded_params[-1][0].shape[0]

    # --- batch tiling --------------------------------------------------------
    # Pick the tile COUNT first (bounded padding), then a lane-aligned tile size.
    # Use >=2 tiles whenever possible so both v7x TensorCores get work.
    b_ceil = _round_up(B, _LANE)
    n_tiles = max(1, _cdiv(b_ceil, _MAX_BLOCK_BATCH))
    if b_ceil >= 2 * _LANE:
        n_tiles = max(n_tiles, 2)
    bp = _round_up(_cdiv(b_ceil, n_tiles), _LANE)
    b_pad = bp * n_tiles
    grid = (n_tiles,)

    # Padded, transposed activations stay f32 (no wrapper-side cast); the kernel
    # casts to the matmul dtype on the (free) VPU slot.
    x_t = jnp.zeros((in_pad, b_pad), jnp.float32).at[:in_dim, :B].set(
        x.astype(jnp.float32).T)

    in_specs = [pl.BlockSpec((in_pad, bp), lambda i: (0, i))]
    flat_params = []
    for wt, bt in padded_params:
        # Constant index_map -> weights/biases stay VMEM-resident across grid steps.
        in_specs.append(pl.BlockSpec(wt.shape, lambda i: (0, 0)))
        in_specs.append(pl.BlockSpec(bt.shape, lambda i: (0, 0)))
        flat_params += [wt, bt]

    out_spec = pl.BlockSpec((out_pad, bp), lambda i: (0, i))

    flops = 2 * b_pad * sum(int(wt.shape[0]) * int(wt.shape[1])
                            for wt, _ in padded_params)
    bytes_accessed = (
        x_t.size * x_t.dtype.itemsize
        + sum(a.size * a.dtype.itemsize for a in flat_params)
        + out_pad * b_pad * 4
    )

    y_pad = pl.pallas_call(
        _make_mlp_kernel(n_layers),
        out_shape=jax.ShapeDtypeStruct((out_pad, b_pad), jnp.float32),
        grid=grid,
        in_specs=in_specs,
        out_specs=out_spec,
        compiler_params=pltpu.CompilerParams(
            dimension_semantics=("parallel",),        # megacore sharding on v7x
        ),
        cost_estimate=pl.CostEstimate(
            flops=flops,
            transcendentals=b_pad * out_pad,
            bytes_accessed=bytes_accessed,
        ),
    )(x_t, *flat_params)

    # Small readback: only (out_pad, b_pad) f32 is sliced/transposed (16x less than before).
    # TODO(synk): fuse the downstream softmax/argmax over the logits into the kernel tail
    # if the consumer allows it, removing this pass entirely.
    return y_pad[:out_dim, :B].T


def init_params(key, input_size, hidden_layers, output_size):
    """torch.nn.Linear-style init: U(-1/sqrt(fan_in), +1/sqrt(fan_in)); weights (in,out)."""
    sizes = [input_size] + list(hidden_layers) + [output_size]
    params = []
    for i in range(len(sizes) - 1):
        fan_in, fan_out = sizes[i], sizes[i + 1]
        key, kw, kb = jax.random.split(key, 3)
        bound = 1.0 / jnp.sqrt(jnp.asarray(fan_in, jnp.float32))
        w = jax.random.uniform(kw, (fan_in, fan_out), jnp.float32, -bound, bound)
        b = jax.random.uniform(kb, (1, fan_out), jnp.float32, -bound, bound)
        params.append((w, b))
    return params


def reference_forward(x, params):
    """Pure-JAX reference of the PyTorch forward (sanity check)."""
    h = x
    for w, b in params[:-1]:
        z = jnp.dot(h, w, precision=jax.lax.Precision.HIGHEST) + b
        h = jnp.maximum(jnp.maximum(z, 0.0), 0.0)
    w, b = params[-1]
    return jnp.tanh(jnp.dot(h, w, precision=jax.lax.Precision.HIGHEST) + b)


def _pick_compute_dtype():
    """bf16 MXU operands (f32 accumulate) on every TPU generation; f32 otherwise."""
    try:
        if jax.devices()[0].platform == "tpu":
            return jnp.bfloat16
    except Exception:
        pass
    return jnp.float32


# TODO(synk): nn.MSELoss / Adam optimizer / device plumbing in the PyTorch module are
# training-time machinery, not part of the forward pass, and are not translated.


if __name__ == "__main__":
    # Pendulum (discrete) style sizes: obs dim 3, two hidden layers of 32, 5 torque bins.
    input_size = 3
    hidden_layers = [32, 32]
    output_size = 5
    batch = 8

    key = jax.random.PRNGKey(0)
    key, kx = jax.random.split(key)
    x = jax.random.normal(kx, (batch, input_size), jnp.float32)

    params = init_params(key, input_size, hidden_layers, output_size)
    y_ref = reference_forward(x, params)

    # 1) f32 path (numerically matches the reference).
    p_f32 = pad_params(params, jnp.float32)
    y = jax.block_until_ready(network_forward(x, p_f32, out_dim=output_size))
    assert y.shape == (batch, output_size)
    assert jnp.allclose(y, y_ref, atol=1e-4, rtol=1e-4), "f32 kernel mismatch vs reference"

    # 2) Generation-tuned path: bf16 MXU operands (f32 accumulate) on any TPU, incl. v5e.
    cdt = _pick_compute_dtype()
    if cdt != jnp.float32:
        p_fast = pad_params(params, cdt)
        y_fast = jax.block_until_ready(network_forward(x, p_fast, out_dim=output_size))
        assert y_fast.shape == (batch, output_size)
        assert jnp.allclose(y_fast, y_ref, atol=5e-2), "bf16 kernel mismatch vs reference"

    print("KERNEL_OK")
</pallas_src>

<mosaic_0001>
module attributes {stable_mosaic.version = 11 : i64} {
  func.func @kernel(%arg0: i32, %arg1: memref<8x128xf32, #tpu.memory_space<vmem>>, %arg2: memref<32x8xf32, #tpu.memory_space<vmem>>, %arg3: memref<32x1xf32, #tpu.memory_space<vmem>>, %arg4: memref<32x32xf32, #tpu.memory_space<vmem>>, %arg5: memref<32x1xf32, #tpu.memory_space<vmem>>, %arg6: memref<8x32xf32, #tpu.memory_space<vmem>>, %arg7: memref<8x1xf32, #tpu.memory_space<vmem>>, %arg8: memref<8x128xf32, #tpu.memory_space<vmem>>) attributes {dimension_semantics = [#tpu.dimension_semantics<parallel>], iteration_bounds = array<i64: 1>, scalar_prefetch = 0 : i64, scratch_operands = 0 : i64, tpu.core_type = #tpu.core_type<tc>, window_params = [{transform_indices = @transform_0, window_bounds = array<i64: 8, 128>}, {pipeline_mode = #tpu.pipeline_mode<synchronous>, transform_indices = @transform_1, window_bounds = array<i64: 32, 8>}, {pipeline_mode = #tpu.pipeline_mode<synchronous>, transform_indices = @transform_2, window_bounds = array<i64: 32, 1>}, {pipeline_mode = #tpu.pipeline_mode<synchronous>, transform_indices = @transform_3, window_bounds = array<i64: 32, 32>}, {pipeline_mode = #tpu.pipeline_mode<synchronous>, transform_indices = @transform_4, window_bounds = array<i64: 32, 1>}, {pipeline_mode = #tpu.pipeline_mode<synchronous>, transform_indices = @transform_5, window_bounds = array<i64: 8, 32>}, {pipeline_mode = #tpu.pipeline_mode<synchronous>, transform_indices = @transform_6, window_bounds = array<i64: 8, 1>}, {transform_indices = @transform_7, window_bounds = array<i64: 8, 128>}]} {
    %c0 = arith.constant 0 : index
    %c0_0 = arith.constant 0 : index
    %0 = vector.load %arg1[%c0, %c0_0] : memref<8x128xf32, #tpu.memory_space<vmem>>, vector<8x128xf32>
    %c0_1 = arith.constant 0 : index
    %c0_2 = arith.constant 0 : index
    %1 = vector.load %arg2[%c0_1, %c0_2] : memref<32x8xf32, #tpu.memory_space<vmem>>, vector<32x8xf32>
    %c0_3 = arith.constant 0 : index
    %c0_4 = arith.constant 0 : index
    %2 = vector.load %arg3[%c0_3, %c0_4] : memref<32x1xf32, #tpu.memory_space<vmem>>, vector<32x1xf32>
    %cst = arith.constant dense<0.000000e+00> : vector<32x128xf32>
    %3 = tpu.matmul %1, %0, %cst {dimension_numbers = #tpu.dot_dimension_numbers<[1], [0], [0], [1], [0, 0, 1, 1], [], []>} : vector<32x8xf32>, vector<8x128xf32>, vector<32x128xf32> -> vector<32x128xf32>
    %4 = vector.broadcast %2 : vector<32x1xf32> to vector<32x128xf32>
    %5 = arith.addf %3, %4 : vector<32x128xf32>
    %cst_5 = arith.constant 0.000000e+00 : f32
    %6 = vector.broadcast %cst_5 : f32 to vector<32x128xf32>
    %7 = arith.maximumf %5, %6 : vector<32x128xf32>
    %c0_6 = arith.constant 0 : index
    %c0_7 = arith.constant 0 : index
    %8 = vector.load %arg4[%c0_6, %c0_7] : memref<32x32xf32, #tpu.memory_space<vmem>>, vector<32x32xf32>
    %c0_8 = arith.constant 0 : index
    %c0_9 = arith.constant 0 : index
    %9 = vector.load %arg5[%c0_8, %c0_9] : memref<32x1xf32, #tpu.memory_space<vmem>>, vector<32x1xf32>
    %cst_10 = arith.constant dense<0.000000e+00> : vector<32x128xf32>
    %10 = tpu.matmul %8, %7, %cst_10 {dimension_numbers = #tpu.dot_dimension_numbers<[1], [0], [0], [1], [0, 0, 1, 1], [], []>} : vector<32x32xf32>, vector<32x128xf32>, vector<32x128xf32> -> vector<32x128xf32>
    %11 = vector.broadcast %9 : vector<32x1xf32> to vector<32x128xf32>
    %12 = arith.addf %10, %11 : vector<32x128xf32>
    %cst_11 = arith.constant 0.000000e+00 : f32
    %13 = vector.broadcast %cst_11 : f32 to vector<32x128xf32>
    %14 = arith.maximumf %12, %13 : vector<32x128xf32>
    %c0_12 = arith.constant 0 : index
    %c0_13 = arith.constant 0 : index
    %15 = vector.load %arg6[%c0_12, %c0_13] : memref<8x32xf32, #tpu.memory_space<vmem>>, vector<8x32xf32>
    %c0_14 = arith.constant 0 : index
    %c0_15 = arith.constant 0 : index
    %16 = vector.load %arg7[%c0_14, %c0_15] : memref<8x1xf32, #tpu.memory_space<vmem>>, vector<8x1xf32>
    %cst_16 = arith.constant dense<0.000000e+00> : vector<8x128xf32>
    %17 = tpu.matmul %15, %14, %cst_16 {dimension_numbers = #tpu.dot_dimension_numbers<[1], [0], [0], [1], [0, 0, 1, 1], [], []>} : vector<8x32xf32>, vector<32x128xf32>, vector<8x128xf32> -> vector<8x128xf32>
    %18 = vector.broadcast %16 : vector<8x1xf32> to vector<8x128xf32>
    %19 = arith.addf %17, %18 : vector<8x128xf32>
    %20 = math.tanh %19 : vector<8x128xf32>
    %c0_17 = arith.constant 0 : index
    %c0_18 = arith.constant 0 : index
    %21 = vector.load %arg8[%c0_17, %c0_18] : memref<8x128xf32, #tpu.memory_space<vmem>>, vector<8x128xf32>
    tpu.vector_store %arg8[%c0_17, %c0_18], %20 {strides = array<i32>} : memref<8x128xf32, #tpu.memory_space<vmem>>, vector<8x128xf32>,
    return
  }
  func.func @transform_0(%arg0: i32) -> (i32, i32) {
    %c0_i32 = arith.constant 0 : i32
    %c0_i32_0 = arith.constant 0 : i32
    return %c0_i32, %arg0 : i32, i32
  }
  func.func @transform_1(%arg0: i32) -> (i32, i32) {
    %c0_i32 = arith.constant 0 : i32
    %c0_i32_0 = arith.constant 0 : i32
    %c0_i32_1 = arith.constant 0 : i32
    return %c0_i32, %c0_i32_0 : i32, i32
  }
  func.func @transform_2(%arg0: i32) -> (i32, i32) {
    %c0_i32 = arith.constant 0 : i32
    %c0_i32_0 = arith.constant 0 : i32
    %c0_i32_1 = arith.constant 0 : i32
    return %c0_i32, %c0_i32_0 : i32, i32
  }
  func.func @transform_3(%arg0: i32) -> (i32, i32) {
    %c0_i32 = arith.constant 0 : i32
    %c0_i32_0 = arith.constant 0 : i32
    %c0_i32_1 = arith.constant 0 : i32
    return %c0_i32, %c0_i32_0 : i32, i32
  }
  func.func @transform_4(%arg0: i32) -> (i32, i32) {
    %c0_i32 = arith.constant 0 : i32
    %c0_i32_0 = arith.constant 0 : i32
    %c0_i32_1 = arith.constant 0 : i32
    return %c0_i32, %c0_i32_0 : i32, i32
  }
  func.func @transform_5(%arg0: i32) -> (i32, i32) {
    %c0_i32 = arith.constant 0 : i32
    %c0_i32_0 = arith.constant 0 : i32
    %c0_i32_1 = arith.constant 0 : i32
    return %c0_i32, %c0_i32_0 : i32, i32
  }
  func.func @transform_6(%arg0: i32) -> (i32, i32) {
    %c0_i32 = arith.constant 0 : i32
    %c0_i32_0 = arith.constant 0 : i32
    %c0_i32_1 = arith.constant 0 : i32
    return %c0_i32, %c0_i32_0 : i32, i32
  }
  func.func @transform_7(%arg0: i32) -> (i32, i32) {
    %c0_i32 = arith.constant 0 : i32
    %c0_i32_0 = arith.constant 0 : i32
    return %c0_i32, %arg0 : i32, i32
  }
}

</mosaic_0001>

<bundles_post_ra>
// kernel: network_forward.1
= control target key start
LH: loop header
LB: loop body
LE: loop exit
PB: predicated region body
PF: predicated region fallthrough
CT: control target
= control target key end

     0   :  { %vm55_vm0 = vcmask 64512   ;;  %v455_v3 = vmov 0   ;;  %vm185_vm1 = vcmask 261120   ;;  %v456_v37 = vmov 0.0|0.0   ;;  %s568_s0 = inlined_call_operand.vmem [shape: f32[8,128], index: 0, kind: input, shape index: {}]   ;;  %s569_s1 = inlined_call_operand.vmem [shape: f32[32,8], index: 1, kind: input, shape index: {}]   ;;  %s570_s2 = inlined_call_operand.vmem [shape: f32[32,1], index: 2, kind: input, shape index: {}]   ;;  %s571_s4 = inlined_call_operand.vmem [shape: f32[32,1], index: 4, kind: input, shape index: {}]   ;;  %s572_s6 = inlined_call_operand.vmem [shape: f32[8,1], index: 6, kind: input, shape index: {}]   ;;  %s573_s3 = inlined_call_operand.vmem [shape: f32[32,32], index: 3, kind: input, shape index: {}]   ;;  %s574_s5 = inlined_call_operand.vmem [shape: f32[8,32], index: 5, kind: input, shape index: {}]   ;;  %s575_s7 = inlined_call_operand.vmem [shape: f32[8,128], index: 7, kind: output, shape index: {}]  }
   0x1   :  { %v26_v0 = vld [vmem:[%s568_s0] sm:$0xff]  ;;  %v28_v2 = vld [vmem:[%s569_s1 + $0x8] sm:$0xff]  ;;  %451 = vset.pattern.permute.xlu0 %v455_v3  ;;  %452 = vset.pattern.permute.xlu1 %v455_v3  ;;  %v29_v4 = vld [vmem:[%s569_s1 + $0x10] sm:$0xff]  ;;  %vm457_vm2 = vmmov 0   ;;  %v458_v38 = vmov 0.0  }
   0x2   :  { %v27_v1 = vld [vmem:[%s569_s1] sm:$0xff]  ;;  %400 = vmatprep.subr.mxu0 %v26_v0  ;;  %v33_v6 = vld [vmem:[%s570_s2 + $0x10] sm:$0xff]  ;;  %v32_v7 = vld [vmem:[%s570_s2 + $0x8] sm:$0xff] }
   0x3   :  { %402 = vmatprep.mubr.msk.f32.mxu0 %vm55_vm0, %v27_v1  ;;  %v31_v5 = vld [vmem:[%s570_s2] sm:$0xff]  ;;  %401 = vmatpush3.msra.mxu0 %v26_v0  ;;  %v30_v8 = vld [vmem:[%s569_s1 + $0x18] sm:$0xff]  ;;  %v162_v11 = vld [vmem:[%s571_s4 + $0x8] sm:$0xff] }
   0x4   :  { %37 = vperm.xlu0 %451, %v31_v5   ;;  %403 = vmatmul.mubr.msk.f32.vlgmr.msra.gmra.mrb[0].mxu0 %vm55_vm0, %v28_v2  ;;  %v34_v9 = vld [vmem:[%s570_s2 + $0x18] sm:$0xff]  ;;  %v161_v10 = vld [vmem:[%s571_s4] sm:$0xff]  ;;  %v163_v12 = vld [vmem:[%s571_s4 + $0x10] sm:$0xff] }
   0x5   :  { %47 = vperm.xlu1 %452, %v33_v6   ;;  %405 = vmatprep.mubr.msk.f32.mxu0 %vm55_vm0, %v29_v4  ;;  %v164_v13 = vld [vmem:[%s571_s4 + $0x18] sm:$0xff]  ;;  %v288_v14 = vld [vmem:[%s572_s6] sm:$0xff]  ;;  %v158_v34 = vld [vmem:[%s573_s3 + $0x8] sm:$0xff] }
   0x6   :  { %v157_v15 = vld [vmem:[%s573_s3] sm:$0xff]  ;;  %v159_v35 = vld [vmem:[%s573_s3 + $0x10] sm:$0xff]  ;;  %v160_v36 = vld [vmem:[%s573_s3 + $0x18] sm:$0xff]  ;;  %441 = vmatprep.subr.bf16.mxu0 %v456_v37 }
   0x7   :  { %416 = vmatprep.mubr.msk.f32.mxu1 %vm185_vm1, %v157_v15  ;;  %v287_v57 = vld [vmem:[%s574_s5] sm:$0xff] }
   0x8   :  { %42 = vperm.xlu0 %451, %v32_v7   ;;  %406 = vmatmul.mubr.msk.f32.gmra.mrb[2].mxu0 %vm55_vm0, %v30_v8 }
   0x9   :  { %52 = vperm.xlu1 %452, %v34_v9   ;;  %430 = vmatprep.mubr.msk.f32.mxu0 %vm457_vm2, %v458_v38 }
   0xc   :  { %167 = vperm.xlu0 %451, %v161_v10  }
   0xd   :  { %172 = vperm.xlu1 %452, %v162_v11  }
  0x10   :  { %177 = vperm.xlu0 %451, %v163_v12  }
  0x11   :  { %182 = vperm.xlu1 %452, %v164_v13  }
  0x14   :  { %291 = vperm.xlu0 %451, %v288_v14  }
  0x83   :  { %v38_v16 = vpop.permute.xlu0 %37 }
  0x84   :  { %v48_v17 = vpop.permute.xlu1 %47 }
  0x87   :  { %v43_v18 = vpop.permute.xlu0 %42 }
  0x88   :  { %v53_v24 = vpop.permute.xlu1 %52 }
  0x8b   :  { %v168_v40 = vpop.permute.xlu0 %167 }
  0x8c   :  { %v173_v39 = vpop.permute.xlu1 %172 }
  0x8f   :  { %v178_v49 = vpop.permute.xlu0 %177 }
  0x90   :  { %v183_v46 = vpop.permute.xlu1 %182 }
  0x93   :  { %v292_v58 = vpop.permute.xlu0 %291 }
  0xd7   :  { %v404_v19 = vpop.f32.mrb[0].mxu0 }
  0xd8   :  { %v140_v20 = vadd.f32 %v404_v19, %v43_v18  ;;  %v134_v21 = vpop.f32.mrb[1].mxu0 }
  0xd9   :  { %v135_v22 = vadd.f32 %v134_v21, %v38_v16 }
  0xda   :  { %v154_v23 = vmax.f32 %v140_v20, 0.0 }
  0xdb   :  { %v153_v25 = vmax.f32 %v135_v22, 0.0  ;;  %v407_v26 = vpop.f32.mrb[2].mxu0 }
  0xdc   :  { %v150_v27 = vadd.f32 %v407_v26, %v53_v24  ;;  %v144_v28 = vpop.f32.mrb[3].mxu0 }
  0xdd   :  { %v145_v29 = vadd.f32 %v144_v28, %v48_v17  ;;  %v433_v30 = vpack.c.bf16 %v154_v23, %v153_v25 }
  0xde   :  { %v156_v31 = vmax.f32 %v150_v27, 0.0 }
  0xdf   :  { %v155_v32 = vmax.f32 %v145_v29, 0.0  ;;  %434 = vmatprep.subr.bf16.mxu1 %v433_v30 }
  0xe0   :  { %436 = vmatpush3.bf16.msra.mxu1 %v433_v30 }
  0xe1   :  { %v437_v33 = vpack.c.bf16 %v156_v31, %v155_v32 }
  0xe3   :  { %438 = vmatprep.subr.bf16.mxu1 %v437_v33 }
  0xe4   :  { %440 = vmatpush3.bf16.msra.mxu1 %v437_v33 }
  0xe7   :  { %417 = vmatmul.mubr.msk.f32.vlgmr.msra.gmra.mrb[0].mxu1 %vm185_vm1, %v158_v34 }
  0xe8   :  { %419 = vmatprep.mubr.msk.f32.mxu1 %vm185_vm1, %v159_v35 }
  0xeb   :  { %420 = vmatmul.mubr.msk.f32.gmra.mrb[2].mxu1 %vm185_vm1, %v160_v36 }
 0x1ba   :  { %v418_v41 = vpop.f32.mrb[0].mxu1 }
 0x1bb   :  { %v270_v42 = vadd.f32 %v418_v41, %v173_v39  ;;  %v264_v43 = vpop.f32.mrb[1].mxu1 }
 0x1bc   :  { %v265_v44 = vadd.f32 %v264_v43, %v168_v40 }
 0x1bd   :  { %v284_v45 = vmax.f32 %v270_v42, 0.0 }
 0x1be   :  { %v283_v47 = vmax.f32 %v265_v44, 0.0  ;;  %v421_v48 = vpop.f32.mrb[2].mxu1 }
 0x1bf   :  { %v280_v50 = vadd.f32 %v421_v48, %v183_v46  ;;  %v274_v51 = vpop.f32.mrb[3].mxu1 }
 0x1c0   :  { %v442_v52 = vpack.c.bf16 %v284_v45, %v283_v47  ;;  %v275_v53 = vadd.f32 %v274_v51, %v178_v49 }
 0x1c1   :  { %v286_v54 = vmax.f32 %v280_v50, 0.0 }
 0x1c2   :  { %v285_v55 = vmax.f32 %v275_v53, 0.0  ;;  %443 = vmatpush3.bf16.msra.mxu0 %v442_v52 }
 0x1c3   :  { %444 = vmatprep.subr.bf16.mxu0 %v456_v37 }
 0x1c4   :  { %v445_v56 = vpack.c.bf16 %v286_v54, %v285_v55 }
 0x1c6   :  { %446 = vmatpush3.bf16.msra.mxu0 %v445_v56 }
 0x1c9   :  { %431 = vmatmul.mubr.msk.f32.vlgmr.msra.gmra.mrb[4].mxu0 %vm185_vm1, %v287_v57 }
 0x29c   :  { %v363_v59 = vpop.f32.mrb[4].mxu0 }
 0x29d   :  { %v364_v60 = vadd.f32 %v363_v59, %v292_v58  ;;  %v432_v61 = vpop.f32.mrb[5].mxu0 }
 0x29f   :  { %453 = vtanh.f32 %v364_v60 }
 0x2a9   :  { %v454_v62 = vpop.eup %453 }
 0x2aa   :  { %368 = vst [vmem:[%s575_s7] sm:$0xff] %v454_v62 }

</bundles_post_ra>
